<compile_context>
chip_gen: v7x
topology: tpu7x:2x2x1
jax: 0.10.0
libtpu: 0.0.40
codegen_flags: <defaults>
</compile_context>

<pallas_src>
import jax
import jax.numpy as jnp
from jax.experimental import pallas as pl
from jax.experimental.pallas import tpu as pltpu


def _round_up(x, m):
    return ((x + m - 1) // m) * m


def _downsample_conv_kernel(x00_ref, x01_ref, x10_ref, x11_ref,
                            w_ref, b_ref, o_ref):
    """One (batch, row-block) tile: 3x3 / stride-2 conv as 9 MXU matmuls."""
    t = o_ref.shape[1]            # output rows in this tile
    wt = o_ref.shape[2]           # padded output cols (multiple of 8)
    cin = w_ref.shape[1]
    cout = w_ref.shape[2]

    # Column-aligned loads plus ONE column-shifted load per q=0 phase, reused
    # by every kw=2 tap (instead of three per-tap offset-1 relayouts).
    a00 = x00_ref[0, 0, :, 0:wt, :]          # (t+1, wt, cin)
    a00s = x00_ref[0, 0, :, 1:wt + 1, :]     # (t+1, wt, cin)  cols shifted +1
    a01 = x01_ref[0, 0]                      # (t+1, wt, cin)
    a10 = x10_ref[0, 0, :, 0:wt, :]          # (t,   wt, cin)
    a10s = x10_ref[0, 0, :, 1:wt + 1, :]     # (t,   wt, cin)  cols shifted +1
    a11 = x11_ref[0, 0]                      # (t,   wt, cin)

    # tap[kh*3 + kw](i, j, :) == padded_input[2i + kh, 2j + kw, :]
    taps = (a00[0:t],     a01[0:t],     a00s[0:t],        # kh = 0
            a10,          a11,          a10s,             # kh = 1
            a00[1:t + 1], a01[1:t + 1], a00s[1:t + 1])    # kh = 2

    # Native-dtype MXU matmuls, f32 accumulation.  Two partial accumulators
    # shorten the accumulation chain (fewer acc read-modify-writes on v5e/v6e).
    acc0 = jnp.zeros((t * wt, cout), jnp.float32)
    acc1 = jnp.zeros((t * wt, cout), jnp.float32)
    for k, tap in enumerate(taps):
        part = jnp.dot(tap.reshape(t * wt, cin), w_ref[k],
                       preferred_element_type=jnp.float32)
        if k % 2 == 0:
            acc0 = acc0 + part
        else:
            acc1 = acc1 + part
    acc = acc0 + acc1 + b_ref[...]           # (1, cout) bias broadcast
    o_ref[0] = acc.reshape(t, wt, cout).astype(o_ref.dtype)


def downsample2d_conv_pallas(x_nchw, w_hwio, bias, *,
                             ho_tile=8,
                             vmem_limit_bytes=32 * 1024 * 1024):
    """PyTorch nn.Conv2d(k=3, stride=2, padding=1, bias=True); NCHW in/out."""
    n, cin, h, w = x_nchw.shape
    k_h, k_w, wcin, cout = w_hwio.shape
    assert (k_h, k_w) == (3, 3) and wcin == cin and bias.shape == (cout,)

    ho = (h - 1) // 2 + 1                    # PyTorch floor((H + 2 - 3)/2) + 1
    wo = (w - 1) // 2 + 1
    wo_t = _round_up(wo, 8)                  # sublane-aligned output width

    # Lane-dense output store when padding cout to 128 is cheap; tiny cout
    # stays narrow so HBM writes of the output are not inflated 16x.
    cout_p = _round_up(cout, 128) if cout >= 64 else _round_up(cout, 8)

    # Pick the biggest row tile whose per-step working set fits a conservative
    # budget (v7x: 64 MiB physical / 32 MiB scoped; leave room for pipelining).
    budget = max(vmem_limit_bytes // 3, 2 * 1024 * 1024)
    itm = jnp.dtype(x_nchw.dtype).itemsize

    def step_bytes(t):
        lane_i = _round_up(cin, 128)
        lane_o = _round_up(cout_p, 128)
        sub_w = _round_up(wo_t + 1, 8)
        phases = (2 * (t + 1) + 2 * t) * sub_w * lane_i * itm
        outb = t * wo_t * lane_o * itm
        wb = 9 * _round_up(cin, 8) * lane_o * 4
        return 2 * (phases + outb + wb) + phases     # dbl-buffer + temporaries

    t_rows = max(1, ho_tile)
    while t_rows > 1 and step_bytes(t_rows) > budget:
        t_rows //= 2

    ho_t = _round_up(ho, t_rows)
    n_rb = ho_t // t_rows                    # row blocks per image

    # ---- wrapper layout plumbing (copy-like ops; XLA fuses them into the
    #      phase producers: ~one read of x, one write of the phase arrays).
    x = jnp.transpose(x_nchw, (0, 2, 3, 1))  # NCHW -> NHWC (channels on lanes)

    def make_phase(p, q, rows_out, cols_out):
        # phase[p,q][i, j, :] == padded_x[2i + p, 2j + q, :]  (zero padding=1)
        src = x[:, (1 - p)::2, (1 - q)::2, :]
        top, left = 1 - p, 1 - q
        return jnp.pad(src, ((0, 0),
                             (top, rows_out - top - src.shape[1]),
                             (left, cols_out - left - src.shape[2]),
                             (0, 0)))

    def block_rows(ph, halo):
        # (n, rows, W, cin) -> (n, n_rb, t_rows(+1), W, cin); the halo row of
        # block r is phase row (r+1)*t_rows (duplicated, ~1/t_rows extra HBM).
        width = ph.shape[2]
        main = ph[:, :ho_t].reshape(n, n_rb, t_rows, width, cin)
        if not halo:
            return main
        halo_rows = ph[:, t_rows::t_rows][:, :, None]   # rows t, 2t, ..., ho_t
        return jnp.concatenate([main, halo_rows], axis=2)

    x00 = block_rows(make_phase(0, 0, ho_t + 1, wo_t + 1), halo=True)
    x01 = block_rows(make_phase(0, 1, ho_t + 1, wo_t),     halo=True)
    x10 = block_rows(make_phase(1, 0, ho_t,     wo_t + 1), halo=False)
    x11 = block_rows(make_phase(1, 1, ho_t,     wo_t),     halo=False)

    w9 = jnp.pad(w_hwio, ((0, 0), (0, 0), (0, 0), (0, cout_p - cout)))
    w9 = w9.reshape(9, cin, cout_p)
    b2 = jnp.pad(bias, (0, cout_p - cout)).reshape(1, cout_p).astype(jnp.float32)

    def phase_spec(rows, width):
        return pl.BlockSpec((1, 1, rows, width, cin),
                            lambda b, r: (b, r, 0, 0, 0))

    cost = pl.CostEstimate(
        flops=2 * n * ho_t * wo_t * 9 * cin * cout_p,
        transcendentals=0,
        bytes_accessed=(4 * n * ho_t * wo_t * cin * itm
                        + n * ho_t * wo_t * cout_p * itm
                        + (9 * cin * cout_p + cout_p) * 4),
    )

    out = pl.pallas_call(
        _downsample_conv_kernel,
        out_shape=jax.ShapeDtypeStruct((n, ho_t, wo_t, cout_p), x.dtype),
        grid_spec=pltpu.PrefetchScalarGridSpec(
            num_scalar_prefetch=0,
            grid=(n, n_rb),
            in_specs=[
                phase_spec(t_rows + 1, wo_t + 1),   # x00 (row + column halo)
                phase_spec(t_rows + 1, wo_t),       # x01 (row halo)
                phase_spec(t_rows,     wo_t + 1),   # x10 (column halo)
                phase_spec(t_rows,     wo_t),       # x11
                pl.BlockSpec((9, cin, cout_p), lambda b, r: (0, 0, 0)),  # weights
                pl.BlockSpec((1, cout_p), lambda b, r: (0, 0)),          # bias
            ],
            out_specs=pl.BlockSpec((1, t_rows, wo_t, cout_p),
                                   lambda b, r: (b, r, 0, 0)),
        ),
        compiler_params=pltpu.CompilerParams(
            dimension_semantics=("parallel", "parallel"),
            vmem_limit_bytes=vmem_limit_bytes,
        ),
        cost_estimate=cost,
    )(x00, x01, x10, x11, w9, b2)

    out = out[:, :ho, :wo, :cout]            # drop row/col/channel padding
    return jnp.transpose(out, (0, 3, 1, 2))  # NHWC -> NCHW


def downsample2d_conv_ref(x_nchw, w_hwio, bias):
    """Pure-JAX reference mirroring nn.Conv2d(k=3, stride=2, padding=1) + bias."""
    out = jax.lax.conv_general_dilated(
        x_nchw, w_hwio,
        window_strides=(2, 2),
        padding=((1, 1), (1, 1)),
        dimension_numbers=("NCHW", "HWIO", "NCHW"),
        precision=jax.lax.Precision.HIGHEST)
    return out + bias[None, :, None, None]


if __name__ == "__main__":
    key = jax.random.PRNGKey(0)
    kx, kw_, kb = jax.random.split(key, 3)

    def bf16_vals(k, shape, scale=1.0):
        # Test inputs are kept exactly bf16-representable so the kernel's
        # default-precision MXU path (bf16 multiplies, f32 accumulate) matches
        # the f32 HIGHEST reference to ~f32 rounding error.
        v = scale * jax.random.normal(k, shape, dtype=jnp.float32)
        return v.astype(jnp.bfloat16).astype(jnp.float32)

    fn = jax.jit(downsample2d_conv_pallas)

    # Case 1: small shapes consistent with the module: batch=2, cin=4, 16x16.
    n, cin, h, w, cout = 2, 4, 16, 16, 8
    x = bf16_vals(kx, (n, cin, h, w))
    w1 = bf16_vals(kw_, (3, 3, cin, cout), 0.1)
    b1 = bf16_vals(kb, (cout,), 0.1)
    out = jax.block_until_ready(fn(x, w1, b1))
    ref = downsample2d_conv_ref(x, w1, b1)
    assert out.shape == (n, cout, h // 2, w // 2), out.shape
    assert out.dtype == x.dtype
    err = float(jnp.max(jnp.abs(out - ref)))
    assert err < 5e-3, f"max abs err {err} vs reference conv"

    # Case 2: odd/ragged spatial dims and several row blocks (exercises the
    # row/column halos, width/row padding and the 2-D grid).
    x2 = bf16_vals(kx, (1, 3, 37, 26))
    w2 = bf16_vals(kw_, (3, 3, 3, 5), 0.1)
    b2 = bf16_vals(kb, (5,), 0.1)
    out2 = jax.block_until_ready(fn(x2, w2, b2))
    ref2 = downsample2d_conv_ref(x2, w2, b2)
    assert out2.shape == ref2.shape, (out2.shape, ref2.shape)
    err2 = float(jnp.max(jnp.abs(out2 - ref2)))
    assert err2 < 5e-3, f"max abs err {err2} vs reference conv (ragged case)"

    print("KERNEL_OK")
</pallas_src>

<mosaic_0001>
module attributes {stable_mosaic.version = 11 : i64} {
  func.func @_downsample_conv_kernel(%arg0: i32, %arg1: i32, %arg2: memref<1x1x9x9x4xf32, #tpu.memory_space<vmem>>, %arg3: memref<1x1x9x8x4xf32, #tpu.memory_space<vmem>>, %arg4: memref<1x1x8x9x4xf32, #tpu.memory_space<vmem>>, %arg5: memref<1x1x8x8x4xf32, #tpu.memory_space<vmem>>, %arg6: memref<9x4x8xf32, #tpu.memory_space<vmem>>, %arg7: memref<1x8xf32, #tpu.memory_space<vmem>>, %arg8: memref<1x8x8x8xf32, #tpu.memory_space<vmem>>) attributes {dimension_semantics = [#tpu.dimension_semantics<parallel>, #tpu.dimension_semantics<parallel>], iteration_bounds = array<i64: 2, 1>, scalar_prefetch = 0 : i64, scratch_operands = 0 : i64, tpu.core_type = #tpu.core_type<tc>, window_params = [{transform_indices = @transform_0, window_bounds = array<i64: 1, 1, 9, 9, 4>}, {transform_indices = @transform_1, window_bounds = array<i64: 1, 1, 9, 8, 4>}, {transform_indices = @transform_2, window_bounds = array<i64: 1, 1, 8, 9, 4>}, {transform_indices = @transform_3, window_bounds = array<i64: 1, 1, 8, 8, 4>}, {pipeline_mode = #tpu.pipeline_mode<synchronous>, transform_indices = @transform_4, window_bounds = array<i64: 9, 4, 8>}, {pipeline_mode = #tpu.pipeline_mode<synchronous>, transform_indices = @transform_5, window_bounds = array<i64: 1, 8>}, {transform_indices = @transform_6, window_bounds = array<i64: 1, 8, 8, 8>}]} {
    %c0 = arith.constant 0 : index
    %c0_0 = arith.constant 0 : index
    %c0_1 = arith.constant 0 : index
    %c0_2 = arith.constant 0 : index
    %c0_3 = arith.constant 0 : index
    %0 = vector.load %arg2[%c0, %c0_0, %c0_1, %c0_2, %c0_3] : memref<1x1x9x9x4xf32, #tpu.memory_space<vmem>>, vector<1x1x9x8x4xf32>
    %1 = vector.shape_cast %0 : vector<1x1x9x8x4xf32> to vector<9x8x4xf32>
    %c0_4 = arith.constant 0 : index
    %c0_5 = arith.constant 0 : index
    %c0_6 = arith.constant 0 : index
    %c1 = arith.constant 1 : index
    %c0_7 = arith.constant 0 : index
    %2 = vector.load %arg2[%c0_4, %c0_5, %c0_6, %c1, %c0_7] : memref<1x1x9x9x4xf32, #tpu.memory_space<vmem>>, vector<1x1x9x8x4xf32>
    %3 = vector.shape_cast %2 : vector<1x1x9x8x4xf32> to vector<9x8x4xf32>
    %c0_8 = arith.constant 0 : index
    %c0_9 = arith.constant 0 : index
    %c0_10 = arith.constant 0 : index
    %c0_11 = arith.constant 0 : index
    %c0_12 = arith.constant 0 : index
    %4 = vector.load %arg3[%c0_8, %c0_9, %c0_10, %c0_11, %c0_12] : memref<1x1x9x8x4xf32, #tpu.memory_space<vmem>>, vector<1x1x9x8x4xf32>
    %5 = vector.shape_cast %4 : vector<1x1x9x8x4xf32> to vector<9x8x4xf32>
    %c0_13 = arith.constant 0 : index
    %c0_14 = arith.constant 0 : index
    %c0_15 = arith.constant 0 : index
    %c0_16 = arith.constant 0 : index
    %c0_17 = arith.constant 0 : index
    %6 = vector.load %arg4[%c0_13, %c0_14, %c0_15, %c0_16, %c0_17] : memref<1x1x8x9x4xf32, #tpu.memory_space<vmem>>, vector<1x1x8x8x4xf32>
    %7 = vector.shape_cast %6 : vector<1x1x8x8x4xf32> to vector<8x8x4xf32>
    %c0_18 = arith.constant 0 : index
    %c0_19 = arith.constant 0 : index
    %c0_20 = arith.constant 0 : index
    %c1_21 = arith.constant 1 : index
    %c0_22 = arith.constant 0 : index
    %8 = vector.load %arg4[%c0_18, %c0_19, %c0_20, %c1_21, %c0_22] : memref<1x1x8x9x4xf32, #tpu.memory_space<vmem>>, vector<1x1x8x8x4xf32>
    %9 = vector.shape_cast %8 : vector<1x1x8x8x4xf32> to vector<8x8x4xf32>
    %c0_23 = arith.constant 0 : index
    %c0_24 = arith.constant 0 : index
    %c0_25 = arith.constant 0 : index
    %c0_26 = arith.constant 0 : index
    %c0_27 = arith.constant 0 : index
    %10 = vector.load %arg5[%c0_23, %c0_24, %c0_25, %c0_26, %c0_27] : memref<1x1x8x8x4xf32, #tpu.memory_space<vmem>>, vector<1x1x8x8x4xf32>
    %11 = vector.shape_cast %10 : vector<1x1x8x8x4xf32> to vector<8x8x4xf32>
    %12 = vector.extract_strided_slice %1 {offsets = [0, 0, 0], sizes = [8, 8, 4], strides = [1, 1, 1]} : vector<9x8x4xf32> to vector<8x8x4xf32>
    %13 = vector.extract_strided_slice %5 {offsets = [0, 0, 0], sizes = [8, 8, 4], strides = [1, 1, 1]} : vector<9x8x4xf32> to vector<8x8x4xf32>
    %14 = vector.extract_strided_slice %3 {offsets = [0, 0, 0], sizes = [8, 8, 4], strides = [1, 1, 1]} : vector<9x8x4xf32> to vector<8x8x4xf32>
    %15 = vector.extract_strided_slice %1 {offsets = [1, 0, 0], sizes = [8, 8, 4], strides = [1, 1, 1]} : vector<9x8x4xf32> to vector<8x8x4xf32>
    %16 = vector.extract_strided_slice %5 {offsets = [1, 0, 0], sizes = [8, 8, 4], strides = [1, 1, 1]} : vector<9x8x4xf32> to vector<8x8x4xf32>
    %17 = vector.extract_strided_slice %3 {offsets = [1, 0, 0], sizes = [8, 8, 4], strides = [1, 1, 1]} : vector<9x8x4xf32> to vector<8x8x4xf32>
    %cst = arith.constant 0.000000e+00 : f32
    %18 = vector.broadcast %cst : f32 to vector<64x8xf32>
    %cst_28 = arith.constant 0.000000e+00 : f32
    %19 = vector.broadcast %cst_28 : f32 to vector<64x8xf32>
    %20 = vector.shape_cast %12 : vector<8x8x4xf32> to vector<64x4xf32>
    %c0_29 = arith.constant 0 : index
    %c0_30 = arith.constant 0 : index
    %c0_31 = arith.constant 0 : index
    %21 = vector.load %arg6[%c0_29, %c0_30, %c0_31] : memref<9x4x8xf32, #tpu.memory_space<vmem>>, vector<1x4x8xf32>
    %22 = vector.shape_cast %21 : vector<1x4x8xf32> to vector<4x8xf32>
    %cst_32 = arith.constant dense<0.000000e+00> : vector<64x8xf32>
    %23 = tpu.matmul %20, %22, %cst_32 {dimension_numbers = #tpu.dot_dimension_numbers<[1], [0], [0], [1], [0, 0, 1, 1], [], []>} : vector<64x4xf32>, vector<4x8xf32>, vector<64x8xf32> -> vector<64x8xf32>
    %24 = arith.addf %18, %23 : vector<64x8xf32>
    %25 = vector.shape_cast %13 : vector<8x8x4xf32> to vector<64x4xf32>
    %c1_33 = arith.constant 1 : index
    %c0_34 = arith.constant 0 : index
    %c0_35 = arith.constant 0 : index
    %26 = vector.load %arg6[%c1_33, %c0_34, %c0_35] : memref<9x4x8xf32, #tpu.memory_space<vmem>>, vector<1x4x8xf32>
    %27 = vector.shape_cast %26 : vector<1x4x8xf32> to vector<4x8xf32>
    %cst_36 = arith.constant dense<0.000000e+00> : vector<64x8xf32>
    %28 = tpu.matmul %25, %27, %cst_36 {dimension_numbers = #tpu.dot_dimension_numbers<[1], [0], [0], [1], [0, 0, 1, 1], [], []>} : vector<64x4xf32>, vector<4x8xf32>, vector<64x8xf32> -> vector<64x8xf32>
    %29 = arith.addf %19, %28 : vector<64x8xf32>
    %30 = vector.shape_cast %14 : vector<8x8x4xf32> to vector<64x4xf32>
    %c2 = arith.constant 2 : index
    %c0_37 = arith.constant 0 : index
    %c0_38 = arith.constant 0 : index
    %31 = vector.load %arg6[%c2, %c0_37, %c0_38] : memref<9x4x8xf32, #tpu.memory_space<vmem>>, vector<1x4x8xf32>
    %32 = vector.shape_cast %31 : vector<1x4x8xf32> to vector<4x8xf32>
    %cst_39 = arith.constant dense<0.000000e+00> : vector<64x8xf32>
    %33 = tpu.matmul %30, %32, %cst_39 {dimension_numbers = #tpu.dot_dimension_numbers<[1], [0], [0], [1], [0, 0, 1, 1], [], []>} : vector<64x4xf32>, vector<4x8xf32>, vector<64x8xf32> -> vector<64x8xf32>
    %34 = arith.addf %24, %33 : vector<64x8xf32>
    %35 = vector.shape_cast %7 : vector<8x8x4xf32> to vector<64x4xf32>
    %c3 = arith.constant 3 : index
    %c0_40 = arith.constant 0 : index
    %c0_41 = arith.constant 0 : index
    %36 = vector.load %arg6[%c3, %c0_40, %c0_41] : memref<9x4x8xf32, #tpu.memory_space<vmem>>, vector<1x4x8xf32>
    %37 = vector.shape_cast %36 : vector<1x4x8xf32> to vector<4x8xf32>
    %cst_42 = arith.constant dense<0.000000e+00> : vector<64x8xf32>
    %38 = tpu.matmul %35, %37, %cst_42 {dimension_numbers = #tpu.dot_dimension_numbers<[1], [0], [0], [1], [0, 0, 1, 1], [], []>} : vector<64x4xf32>, vector<4x8xf32>, vector<64x8xf32> -> vector<64x8xf32>
    %39 = arith.addf %29, %38 : vector<64x8xf32>
    %40 = vector.shape_cast %11 : vector<8x8x4xf32> to vector<64x4xf32>
    %c4 = arith.constant 4 : index
    %c0_43 = arith.constant 0 : index
    %c0_44 = arith.constant 0 : index
    %41 = vector.load %arg6[%c4, %c0_43, %c0_44] : memref<9x4x8xf32, #tpu.memory_space<vmem>>, vector<1x4x8xf32>
    %42 = vector.shape_cast %41 : vector<1x4x8xf32> to vector<4x8xf32>
    %cst_45 = arith.constant dense<0.000000e+00> : vector<64x8xf32>
    %43 = tpu.matmul %40, %42, %cst_45 {dimension_numbers = #tpu.dot_dimension_numbers<[1], [0], [0], [1], [0, 0, 1, 1], [], []>} : vector<64x4xf32>, vector<4x8xf32>, vector<64x8xf32> -> vector<64x8xf32>
    %44 = arith.addf %34, %43 : vector<64x8xf32>
    %45 = vector.shape_cast %9 : vector<8x8x4xf32> to vector<64x4xf32>
    %c5 = arith.constant 5 : index
    %c0_46 = arith.constant 0 : index
    %c0_47 = arith.constant 0 : index
    %46 = vector.load %arg6[%c5, %c0_46, %c0_47] : memref<9x4x8xf32, #tpu.memory_space<vmem>>, vector<1x4x8xf32>
    %47 = vector.shape_cast %46 : vector<1x4x8xf32> to vector<4x8xf32>
    %cst_48 = arith.constant dense<0.000000e+00> : vector<64x8xf32>
    %48 = tpu.matmul %45, %47, %cst_48 {dimension_numbers = #tpu.dot_dimension_numbers<[1], [0], [0], [1], [0, 0, 1, 1], [], []>} : vector<64x4xf32>, vector<4x8xf32>, vector<64x8xf32> -> vector<64x8xf32>
    %49 = arith.addf %39, %48 : vector<64x8xf32>
    %50 = vector.shape_cast %15 : vector<8x8x4xf32> to vector<64x4xf32>
    %c6 = arith.constant 6 : index
    %c0_49 = arith.constant 0 : index
    %c0_50 = arith.constant 0 : index
    %51 = vector.load %arg6[%c6, %c0_49, %c0_50] : memref<9x4x8xf32, #tpu.memory_space<vmem>>, vector<1x4x8xf32>
    %52 = vector.shape_cast %51 : vector<1x4x8xf32> to vector<4x8xf32>
    %cst_51 = arith.constant dense<0.000000e+00> : vector<64x8xf32>
    %53 = tpu.matmul %50, %52, %cst_51 {dimension_numbers = #tpu.dot_dimension_numbers<[1], [0], [0], [1], [0, 0, 1, 1], [], []>} : vector<64x4xf32>, vector<4x8xf32>, vector<64x8xf32> -> vector<64x8xf32>
    %54 = arith.addf %44, %53 : vector<64x8xf32>
    %55 = vector.shape_cast %16 : vector<8x8x4xf32> to vector<64x4xf32>
    %c7 = arith.constant 7 : index
    %c0_52 = arith.constant 0 : index
    %c0_53 = arith.constant 0 : index
    %56 = vector.load %arg6[%c7, %c0_52, %c0_53] : memref<9x4x8xf32, #tpu.memory_space<vmem>>, vector<1x4x8xf32>
    %57 = vector.shape_cast %56 : vector<1x4x8xf32> to vector<4x8xf32>
    %cst_54 = arith.constant dense<0.000000e+00> : vector<64x8xf32>
    %58 = tpu.matmul %55, %57, %cst_54 {dimension_numbers = #tpu.dot_dimension_numbers<[1], [0], [0], [1], [0, 0, 1, 1], [], []>} : vector<64x4xf32>, vector<4x8xf32>, vector<64x8xf32> -> vector<64x8xf32>
    %59 = arith.addf %49, %58 : vector<64x8xf32>
    %60 = vector.shape_cast %17 : vector<8x8x4xf32> to vector<64x4xf32>
    %c8 = arith.constant 8 : index
    %c0_55 = arith.constant 0 : index
    %c0_56 = arith.constant 0 : index
    %61 = vector.load %arg6[%c8, %c0_55, %c0_56] : memref<9x4x8xf32, #tpu.memory_space<vmem>>, vector<1x4x8xf32>
    %62 = vector.shape_cast %61 : vector<1x4x8xf32> to vector<4x8xf32>
    %cst_57 = arith.constant dense<0.000000e+00> : vector<64x8xf32>
    %63 = tpu.matmul %60, %62, %cst_57 {dimension_numbers = #tpu.dot_dimension_numbers<[1], [0], [0], [1], [0, 0, 1, 1], [], []>} : vector<64x4xf32>, vector<4x8xf32>, vector<64x8xf32> -> vector<64x8xf32>
    %64 = arith.addf %54, %63 : vector<64x8xf32>
    %65 = arith.addf %64, %59 : vector<64x8xf32>
    %c0_58 = arith.constant 0 : index
    %c0_59 = arith.constant 0 : index
    %66 = vector.load %arg7[%c0_58, %c0_59] : memref<1x8xf32, #tpu.memory_space<vmem>>, vector<1x8xf32>
    %67 = vector.broadcast %66 : vector<1x8xf32> to vector<64x8xf32>
    %68 = arith.addf %65, %67 : vector<64x8xf32>
    %69 = vector.shape_cast %68 : vector<64x8xf32> to vector<8x8x8xf32>
    %c0_60 = arith.constant 0 : index
    %c0_61 = arith.constant 0 : index
    %c0_62 = arith.constant 0 : index
    %c0_63 = arith.constant 0 : index
    %70 = vector.load %arg8[%c0_60, %c0_61, %c0_62, %c0_63] : memref<1x8x8x8xf32, #tpu.memory_space<vmem>>, vector<1x8x8x8xf32>
    %71 = vector.shape_cast %70 : vector<1x8x8x8xf32> to vector<8x8x8xf32>
    %72 = vector.shape_cast %69 : vector<8x8x8xf32> to vector<1x8x8x8xf32>
    tpu.vector_store %arg8[%c0_60, %c0_61, %c0_62, %c0_63], %72 {strides = array<i32>} : memref<1x8x8x8xf32, #tpu.memory_space<vmem>>, vector<1x8x8x8xf32>,
    return
  }
  func.func @transform_0(%arg0: i32, %arg1: i32) -> (i32, i32, i32, i32, i32) {
    %c0_i32 = arith.constant 0 : i32
    %c0_i32_0 = arith.constant 0 : i32
    %c0_i32_1 = arith.constant 0 : i32
    %c0_i32_2 = arith.constant 0 : i32
    return %arg0, %arg1, %c0_i32, %c0_i32_0, %c0_i32_1 : i32, i32, i32, i32, i32
  }
  func.func @transform_1(%arg0: i32, %arg1: i32) -> (i32, i32, i32, i32, i32) {
    %c0_i32 = arith.constant 0 : i32
    %c0_i32_0 = arith.constant 0 : i32
    %c0_i32_1 = arith.constant 0 : i32
    %c0_i32_2 = arith.constant 0 : i32
    return %arg0, %arg1, %c0_i32, %c0_i32_0, %c0_i32_1 : i32, i32, i32, i32, i32
  }
  func.func @transform_2(%arg0: i32, %arg1: i32) -> (i32, i32, i32, i32, i32) {
    %c0_i32 = arith.constant 0 : i32
    %c0_i32_0 = arith.constant 0 : i32
    %c0_i32_1 = arith.constant 0 : i32
    %c0_i32_2 = arith.constant 0 : i32
    return %arg0, %arg1, %c0_i32, %c0_i32_0, %c0_i32_1 : i32, i32, i32, i32, i32
  }
  func.func @transform_3(%arg0: i32, %arg1: i32) -> (i32, i32, i32, i32, i32) {
    %c0_i32 = arith.constant 0 : i32
    %c0_i32_0 = arith.constant 0 : i32
    %c0_i32_1 = arith.constant 0 : i32
    %c0_i32_2 = arith.constant 0 : i32
    return %arg0, %arg1, %c0_i32, %c0_i32_0, %c0_i32_1 : i32, i32, i32, i32, i32
  }
  func.func @transform_4(%arg0: i32, %arg1: i32) -> (i32, i32, i32) {
    %c0_i32 = arith.constant 0 : i32
    %c0_i32_0 = arith.constant 0 : i32
    %c0_i32_1 = arith.constant 0 : i32
    %c0_i32_2 = arith.constant 0 : i32
    return %c0_i32, %c0_i32_0, %c0_i32_1 : i32, i32, i32
  }
  func.func @transform_5(%arg0: i32, %arg1: i32) -> (i32, i32) {
    %c0_i32 = arith.constant 0 : i32
    %c0_i32_0 = arith.constant 0 : i32
    %c0_i32_1 = arith.constant 0 : i32
    return %c0_i32, %c0_i32_0 : i32, i32
  }
  func.func @transform_6(%arg0: i32, %arg1: i32) -> (i32, i32, i32, i32) {
    %c0_i32 = arith.constant 0 : i32
    %c0_i32_0 = arith.constant 0 : i32
    %c0_i32_1 = arith.constant 0 : i32
    return %arg0, %arg1, %c0_i32, %c0_i32_0 : i32, i32, i32, i32
  }
}

</mosaic_0001>

<bundles_post_ra>
// kernel: downsample2d_conv_pallas.1
= control target key start
LH: loop header
LB: loop body
LE: loop exit
PB: predicated region body
PF: predicated region fallthrough
CT: control target
= control target key end

     0   :  { %s2277_s21 = smov 0   ;;  %s2279_s22 = smov 0   ;;  %s2562_s0 = inlined_call_operand.vmem [shape: f32[2,1,9,9,4], index: 0, kind: input, shape index: {}]   ;;  %s2563_s1 = inlined_call_operand.vmem [shape: f32[2,1,9,8,4], index: 1, kind: input, shape index: {}]   ;;  %s2564_s2 = inlined_call_operand.vmem [shape: f32[2,1,8,9,4], index: 2, kind: input, shape index: {}]   ;;  %s2565_s3 = inlined_call_operand.vmem [shape: f32[2,1,8,8,4], index: 3, kind: input, shape index: {}]   ;;  %s2566_s4 = inlined_call_operand.vmem [shape: f32[9,4,8], index: 4, kind: input, shape index: {}]   ;;  %s2567_s5 = inlined_call_operand.vmem [shape: f32[1,8], index: 5, kind: input, shape index: {}]   ;;  %s2568_s6 = inlined_call_operand.vmem [shape: f32[2,8,8,8], index: 6, kind: output, shape index: {}]  }
   0x1   :  { %s2281_s23 = smov 0  }
   0x2 LB: > { %s28_s24 = sadd.s32 1, %s2236_s22  ;;  %p1815_p0 = scmp.ge.s32.totalorder %s2240_s23, 1  ;;  %s2240_s23 = sphi %s2281_s23, %s16_s23   ;;  %s2236_s22 = sphi %s2279_s22, %s2570_s22   ;;  %s2232_s21 = sphi %s2277_s21, %s2569_s21  }
   0x3   : > { %p30_p1 = scmp.ge.s32.totalorder %s28_s24, 2  ;;  %p280_p2 = scmp.lt.s32.totalorder %s2240_s23, 3 }
   0x5   : > { %s2572_s24 = smov (%p30_p1, %s28_s24), 0  ;;  %p281_p3 = pnand %p1815_p0, %p280_p2 }
   0x6   : > { %v1825_v0 = vld [vmem:[%s2566_s4 + $0x8] sm:$0xf] (!%p281_p3)  ;;  %vm472_vm0 = vcmask (!%p281_p3), 1043456   ;;  %v2301_v1 = vld [vmem:[%s2566_s4 + $0x10] sm:$0xf] (!%p281_p3)  ;;  %p345_p4 = scmp.lt.s32.totalorder (!%p281_p3), %s2232_s21, 1 }
   0x7   : > { %284 = sbr.rel (%p281_p3) target bundleno = 307 (0x133), region = 44  ;;  %2000 = vmatprep.subr.msk.mxu1 (!%p281_p3), %vm472_vm0, %v1825_v0  ;;  %2056 = vmatprep.subr.msk.mxu0 (!%p281_p3), %vm472_vm0, %v2301_v1  ;;  %v442_v2 = vld [vmem:[%s2566_s4] sm:$0xf] (!%p281_p3)  ;;  %v1873_v3 = vld [vmem:[%s2566_s4 + $0x14] sm:$0xf] (!%p281_p3)  ;;  %vm447_vm1 = vcmask (!%p281_p3), 31744  }
   0x8   : > { %2001 = vmatpush3.msk.msra.mxu1 (!%p281_p3), %vm472_vm0, %v1825_v0  ;;  %2057 = vmatpush3.msk.msra.mxu0 (!%p281_p3), %vm472_vm0, %v2301_v1  ;;  %v1883_v10 = vld [vmem:[%s2566_s4 + $0x18] sm:$0xf] (!%p281_p3)  ;;  %v1844_v11 = vld [vmem:[%s2566_s4 + $0xc] sm:$0xf] (!%p281_p3)  ;;  %v1893_v20 = vld [vmem:[%s2566_s4 + $0x1c] sm:$0xf] (!%p281_p3) }
   0x9   : > { %2014 = vmatprep.subr.msk.mxu1 (!%p281_p3), %vm472_vm0, %v442_v2  ;;  %2070 = vmatprep.subr.msk.mxu0 (!%p281_p3), %vm472_vm0, %v1873_v3  ;;  %v1824_v29 = vld [vmem:[%s2566_s4 + $0x4] sm:$0xf] (!%p281_p3)  ;;  %v1903_v35 = vld [vmem:[%s2566_s4 + $0x20] sm:$0xf] (!%p281_p3)  ;;  %vm1649_vm2 = vcmask (!%p281_p3), 64512  }
   0xe   : > { %s2574_s21 = smov (!%p345_p4, %s2232_s21), 1 }
   0xf   : > { %s2192_s9 = smul.u32 144, %s2574_s21  ;;  %s1916_s10 = sshll.u32 %s2574_s21, 7 }
  0x10   : > { %s1917_s11 = sshll.u32 %s2574_s21, 6  ;;  %s2340_s20 = scalar_lea.vmem %s2564_s2, %s1916_s10 }
  0x11   : > { %s2325_s14 = scalar_lea.vmem %s2562_s0, %s2192_s9  ;;  %s2332_s17 = scalar_lea.vmem %s2565_s3, %s1917_s11  ;;  %v426_v14 = vld [vmem:[%s2340_s20 + $0x1] sm:$0xff]  ;;  %v427_v16 = vld [vmem:[%s2340_s20 + $0x11] sm:$0xff] }
  0x12   : > { %v434_v4 = vld [vmem:[%s2332_s17] sm:$0xff]  ;;  %v435_v6 = vld [vmem:[%s2332_s17 + $0x8] sm:$0xff]  ;;  %v2345_v7 = vld [vmem:[%s2325_s14 + $0x11] sm:$0xff]  ;;  %s2193_s12 = smul.u32 72, %s2574_s21 }
  0x13   : > { %v400_v5 = vld [vmem:[%s2325_s14 + $0x1] sm:$0xff]  ;;  %2058 = vmatprep.mubr.msk.f32.mxu0 %vm447_vm1, %v434_v4  ;;  %v436_v8 = vld [vmem:[%s2332_s17 + $0x10] sm:$0xff]  ;;  %v437_v12 = vld [vmem:[%s2332_s17 + $0x18] sm:$0xff] }
  0x14   : > { %2002 = vmatprep.mubr.msk.f32.mxu1 %vm447_vm1, %v400_v5  ;;  %v2349_v9 = vld [vmem:[%s2325_s14 + $0x21] sm:$0xff]  ;;  %2059 = vmatmul.mubr.msk.f32.vlgmr.msra.gmra.mrb[0].mxu0 %vm447_vm1, %v435_v6  ;;  %v2364_v13 = vld [vmem:[%s2325_s14 + $0x31] sm:$0xff]  ;;  %s2454_s16 = scalar_lea.vmem %s2563_s1, %s2193_s12 }
  0x15   : > { %2003 = vmatmul.mubr.msk.f32.vlgmr.msra.gmra.mrb[0].mxu1 %vm447_vm1, %v2345_v7  ;;  %2071 = vmatpush3.msk.msra.mxu0 %vm472_vm0, %v1873_v3  ;;  %v2371_v15 = vld [vmem:[%s2325_s14 + $0x41] sm:$0xff]  ;;  %v2383_v17 = vld [vmem:[%s2325_s14 + $0x51] sm:$0xff] }
  0x16   : > { %2015 = vmatpush3.msk.msra.mxu1 %vm472_vm0, %v442_v2  ;;  %2061 = vmatprep.mubr.msk.f32.mxu0 %vm447_vm1, %v436_v8  ;;  %v428_v18 = vld [vmem:[%s2340_s20 + $0x21] sm:$0xff]  ;;  %v429_v21 = vld [vmem:[%s2340_s20 + $0x31] sm:$0xff] }
  0x17   : > { %2005 = vmatprep.mubr.msk.f32.mxu1 %vm447_vm1, %v2349_v9  ;;  %2084 = vmatprep.subr.msk.mxu0 %vm472_vm0, %v1883_v10  ;;  %v2387_v19 = vld [vmem:[%s2325_s14 + $0x61] sm:$0xff]  ;;  %v2399_v22 = vld [vmem:[%s2325_s14 + $0x71] sm:$0xff] }
  0x18   : > { %2028 = vmatprep.subr.msk.mxu1 %vm472_vm0, %v1844_v11  ;;  %2062 = vmatmul.mubr.msk.f32.gmra.mrb[2].mxu0 %vm447_vm1, %v437_v12  ;;  %v430_v23 = vld [vmem:[%s2340_s20 + $0x41] sm:$0xff]  ;;  %v431_v25 = vld [vmem:[%s2340_s20 + $0x51] sm:$0xff] }
  0x19   : > { %2006 = vmatmul.mubr.msk.f32.gmra.mrb[2].mxu1 %vm447_vm1, %v2364_v13  ;;  %2072 = vmatprep.mubr.msk.f32.mxu0 %vm447_vm1, %v426_v14  ;;  %v391_v24 = vld [vmem:[%s2325_s14] sm:$0xff]  ;;  %v392_v26 = vld [vmem:[%s2325_s14 + $0x10] sm:$0xff]  ;;  %v410_v42 = vld [vmem:[%s2454_s16 + $0x8] sm:$0xff] }
  0x1a   : > { %2008 = vmatprep.mubr.msk.f32.mxu1 %vm447_vm1, %v2371_v15  ;;  %v432_v27 = vld [vmem:[%s2340_s20 + $0x61] sm:$0xff]  ;;  %v433_v30 = vld [vmem:[%s2340_s20 + $0x71] sm:$0xff] }
  0x1b   : > { %v393_v28 = vld [vmem:[%s2325_s14 + $0x20] sm:$0xff]  ;;  %v394_v31 = vld [vmem:[%s2325_s14 + $0x30] sm:$0xff]  ;;  %v412_v46 = vld [vmem:[%s2454_s16 + $0x18] sm:$0xff] }
  0x1c   : > { %2073 = vmatmul.mubr.msk.f32.vlgmr.msra.gmra.mrb[0].mxu0 %vm447_vm1, %v427_v16  ;;  %v395_v32 = vld [vmem:[%s2325_s14 + $0x40] sm:$0xff]  ;;  %v396_v33 = vld [vmem:[%s2325_s14 + $0x50] sm:$0xff]  ;;  %v414_v50 = vld [vmem:[%s2454_s16 + $0x28] sm:$0xff] }
  0x1d   : > { %2009 = vmatmul.mubr.msk.f32.gmra.mrb[4].mxu1 %vm447_vm1, %v2383_v17  ;;  %2085 = vmatpush3.msk.msra.mxu0 %vm472_vm0, %v1883_v10  ;;  %v397_v34 = vld [vmem:[%s2325_s14 + $0x60] sm:$0xff]  ;;  %v398_v36 = vld [vmem:[%s2325_s14 + $0x70] sm:$0xff]  ;;  %v416_v53 = vld [vmem:[%s2454_s16 + $0x38] sm:$0xff] }
  0x1e   : > { %2075 = vmatprep.mubr.msk.f32.mxu0 %vm447_vm1, %v428_v18  ;;  %2011 = vmatprep.mubr.msk.f32.mxu1 %vm447_vm1, %v2387_v19  ;;  %v418_v37 = vld [vmem:[%s2340_s20] sm:$0xff]  ;;  %v419_v38 = vld [vmem:[%s2340_s20 + $0x10] sm:$0xff]  ;;  %v439_v56 = vld [vmem:[%s2332_s17 + $0x28] sm:$0xff] }
  0x1f   : > { %2098 = vmatprep.subr.msk.mxu0 %vm472_vm0, %v1893_v20  ;;  %v420_v39 = vld [vmem:[%s2340_s20 + $0x20] sm:$0xff]  ;;  %v421_v41 = vld [vmem:[%s2340_s20 + $0x30] sm:$0xff]  ;;  %v441_v59 = vld [vmem:[%s2332_s17 + $0x38] sm:$0xff] }
  0x20   : > { %2076 = vmatmul.mubr.msk.f32.gmra.mrb[2].mxu0 %vm447_vm1, %v429_v21  ;;  %v399_v40 = vld [vmem:[%s2325_s14 + $0x80] sm:$0xff]  ;;  %v411_v44 = vld [vmem:[%s2454_s16 + $0x10] sm:$0xff] }
  0x21   : > { %2012 = vmatmul.mubr.msk.f32.gmra.mrb[6].mxu1 %vm447_vm1, %v2399_v22  ;;  %2078 = vmatprep.mubr.msk.f32.mxu0 %vm447_vm1, %v430_v23  ;;  %v422_v43 = vld [vmem:[%s2340_s20 + $0x40] sm:$0xff]  ;;  %v423_v45 = vld [vmem:[%s2340_s20 + $0x50] sm:$0xff] }
  0x22   : > { %2016 = vmatprep.mubr.msk.f32.mxu1 %vm447_vm1, %v391_v24  ;;  %v424_v47 = vld [vmem:[%s2340_s20 + $0x60] sm:$0xff]  ;;  %v425_v49 = vld [vmem:[%s2340_s20 + $0x70] sm:$0xff] }
  0x23   : > { %v413_v48 = vld [vmem:[%s2454_s16 + $0x20] sm:$0xff]  ;;  %v415_v52 = vld [vmem:[%s2454_s16 + $0x30] sm:$0xff] }
  0x24   : > { %2079 = vmatmul.mubr.msk.f32.gmra.mrb[4].mxu0 %vm447_vm1, %v431_v25  ;;  %v409_v51 = vld [vmem:[%s2454_s16] sm:$0xff]  ;;  %v440_v57 = vld [vmem:[%s2332_s17 + $0x30] sm:$0xff] }
  0x25   : > { %2017 = vmatmul.mubr.msk.f32.vlgmr.msra.gmra.mrb[0].mxu1 %vm447_vm1, %v392_v26  ;;  %2081 = vmatprep.mubr.msk.f32.mxu0 %vm447_vm1, %v432_v27  ;;  %v417_v54 = vld [vmem:[%s2454_s16 + $0x40] sm:$0xff] }
  0x26   : > { %2029 = vmatpush3.msk.msra.mxu1 %vm472_vm0, %v1844_v11  ;;  %2019 = vmatprep.mubr.msk.f32.mxu1 %vm447_vm1, %v393_v28  ;;  %v438_v55 = vld [vmem:[%s2332_s17 + $0x20] sm:$0xff] }
  0x27   : > { %2042 = vmatprep.subr.msk.mxu1 %vm472_vm0, %v1824_v29  ;;  %v408_v58 = vld [vmem:[%s2325_s14 + $0x81] sm:$0xff]  ;;  %s2535_s14 = scalar_lea.vmem %s2568_s6, %s1917_s11 }
  0x28   : > { %2082 = vmatmul.mubr.msk.f32.gmra.mrb[6].mxu0 %vm447_vm1, %v433_v30 }
  0x29   : > { %2020 = vmatmul.mubr.msk.f32.gmra.mrb[2].mxu1 %vm447_vm1, %v394_v31  ;;  %2086 = vmatprep.mubr.msk.f32.mxu0 %vm447_vm1, %v392_v26 }
  0x2a   : > { %2022 = vmatprep.mubr.msk.f32.mxu1 %vm447_vm1, %v395_v32 }
  0x2c   : > { %2087 = vmatmul.mubr.msk.f32.vlgmr.msra.gmra.mrb[0].mxu0 %vm447_vm1, %v393_v28 }
  0x2d   : > { %2023 = vmatmul.mubr.msk.f32.gmra.mrb[4].mxu1 %vm447_vm1, %v396_v33  ;;  %2099 = vmatpush3.msk.msra.mxu0 %vm472_vm0, %v1893_v20 }
  0x2e   : > { %2089 = vmatprep.mubr.msk.f32.mxu0 %vm447_vm1, %v394_v31  ;;  %2025 = vmatprep.mubr.msk.f32.mxu1 %vm447_vm1, %v397_v34 }
  0x2f   : > { %2112 = vmatprep.subr.msk.mxu0 %vm472_vm0, %v1903_v35 }
  0x30   : > { %2090 = vmatmul.mubr.msk.f32.gmra.mrb[2].mxu0 %vm447_vm1, %v395_v32 }
  0x31   : > { %2026 = vmatmul.mubr.msk.f32.gmra.mrb[6].mxu1 %vm447_vm1, %v398_v36  ;;  %2092 = vmatprep.mubr.msk.f32.mxu0 %vm447_vm1, %v396_v33 }
  0x32   : > { %2030 = vmatprep.mubr.msk.f32.mxu1 %vm447_vm1, %v418_v37 }
  0x34   : > { %2093 = vmatmul.mubr.msk.f32.gmra.mrb[4].mxu0 %vm447_vm1, %v397_v34 }
  0x35   : > { %2031 = vmatmul.mubr.msk.f32.vlgmr.msra.gmra.mrb[0].mxu1 %vm447_vm1, %v419_v38  ;;  %2095 = vmatprep.mubr.msk.f32.mxu0 %vm447_vm1, %v398_v36 }
  0x36   : > { %2043 = vmatpush3.msk.msra.mxu1 %vm472_vm0, %v1824_v29  ;;  %2033 = vmatprep.mubr.msk.f32.mxu1 %vm447_vm1, %v420_v39 }
  0x37   : > { %2126 = vmatprep.subr.msk.mxu1 %vm472_vm0, %v2301_v1 }
  0x38   : > { %2096 = vmatmul.mubr.msk.f32.gmra.mrb[6].mxu0 %vm447_vm1, %v399_v40 }
  0x39   : > { %2034 = vmatmul.mubr.msk.f32.gmra.mrb[2].mxu1 %vm447_vm1, %v421_v41  ;;  %2100 = vmatprep.mubr.msk.f32.mxu0 %vm447_vm1, %v410_v42 }
  0x3a   : > { %2036 = vmatprep.mubr.msk.f32.mxu1 %vm447_vm1, %v422_v43 }
  0x3c   : > { %2101 = vmatmul.mubr.msk.f32.vlgmr.msra.gmra.mrb[0].mxu0 %vm447_vm1, %v411_v44 }
  0x3d   : > { %2037 = vmatmul.mubr.msk.f32.gmra.mrb[4].mxu1 %vm447_vm1, %v423_v45  ;;  %2113 = vmatpush3.msk.msra.mxu0 %vm472_vm0, %v1903_v35 }
  0x3e   : > { %2103 = vmatprep.mubr.msk.f32.mxu0 %vm447_vm1, %v412_v46  ;;  %2039 = vmatprep.mubr.msk.f32.mxu1 %vm447_vm1, %v424_v47 }
  0x40   : > { %2104 = vmatmul.mubr.msk.f32.gmra.mrb[2].mxu0 %vm447_vm1, %v413_v48 }
  0x41   : > { %2040 = vmatmul.mubr.msk.f32.gmra.mrb[6].mxu1 %vm447_vm1, %v425_v49  ;;  %2106 = vmatprep.mubr.msk.f32.mxu0 %vm447_vm1, %v414_v50 }
  0x42   : > { %2044 = vmatprep.mubr.msk.f32.mxu1 %vm447_vm1, %v409_v51 }
  0x44   : > { %2107 = vmatmul.mubr.msk.f32.gmra.mrb[4].mxu0 %vm447_vm1, %v415_v52 }
  0x45   : > { %2045 = vmatmul.mubr.msk.f32.vlgmr.msra.gmra.mrb[0].mxu1 %vm447_vm1, %v410_v42  ;;  %2109 = vmatprep.mubr.msk.f32.mxu0 %vm447_vm1, %v416_v53 }
  0x46   : > { %2127 = vmatpush3.msk.msra.mxu1 %vm472_vm0, %v2301_v1  ;;  %2047 = vmatprep.mubr.msk.f32.mxu1 %vm447_vm1, %v411_v44  ;;  %v1913_v1 = vld [vmem:[%s2567_s5] ss:$0 sm:$0xff] }
  0x48   : > { %2110 = vmatmul.mubr.msk.f32.gmra.mrb[6].mxu0 %vm447_vm1, %v417_v54 }
  0x49   : > { %2048 = vmatmul.mubr.msk.f32.gmra.mrb[2].mxu1 %vm447_vm1, %v412_v46  ;;  %2114 = vmatprep.mubr.msk.f32.mxu0 %vm447_vm1, %v2345_v7 }
  0x4a   : > { %2050 = vmatprep.mubr.msk.f32.mxu1 %vm447_vm1, %v413_v48 }
  0x4c   : > { %2115 = vmatmul.mubr.msk.f32.vlgmr.msra.gmra.mrb[0].mxu0 %vm447_vm1, %v2349_v9 }
  0x4d   : > { %2051 = vmatmul.mubr.msk.f32.gmra.mrb[4].mxu1 %vm447_vm1, %v414_v50  ;;  %2117 = vmatprep.mubr.msk.f32.mxu0 %vm447_vm1, %v2364_v13 }
  0x4e   : > { %2053 = vmatprep.mubr.msk.f32.mxu1 %vm447_vm1, %v415_v52 }
  0x50   : > { %2118 = vmatmul.mubr.msk.f32.gmra.mrb[2].mxu0 %vm447_vm1, %v2371_v15 }
  0x51   : > { %2054 = vmatmul.mubr.msk.f32.gmra.mrb[6].mxu1 %vm447_vm1, %v416_v53  ;;  %2120 = vmatprep.mubr.msk.f32.mxu0 %vm447_vm1, %v2383_v17 }
  0x52   : > { %2064 = vmatprep.mubr.msk.f32.mxu1 %vm447_vm1, %v438_v55 }
  0x54   : > { %2121 = vmatmul.mubr.msk.f32.gmra.mrb[4].mxu0 %vm447_vm1, %v2387_v19 }
  0x55   : > { %2065 = vmatmul.mubr.msk.f32.vlgmr.msra.gmra.mrb[4].mxu1 %vm447_vm1, %v439_v56  ;;  %2123 = vmatprep.mubr.msk.f32.mxu0 %vm447_vm1, %v2399_v22 }
  0x56   : > { %2067 = vmatprep.mubr.msk.f32.mxu1 %vm447_vm1, %v440_v57 }
  0x58   : > { %2124 = vmatmul.mubr.msk.f32.gmra.mrb[6].mxu0 %vm447_vm1, %v408_v58 }
  0x59   : > { %2068 = vmatmul.mubr.msk.f32.gmra.mrb[6].mxu1 %vm447_vm1, %v441_v59 }
 0x118   : > { %v2046_v60 = vpop.f32.mrb[0].mxu1 }
 0x119   : > { %v940_v61 = vpop.f32.mrb[1].mxu1 }
 0x11c   : > { %v2049_v62 = vpop.f32.mrb[2].mxu1 }
 0x11d   : > { %v950_v63 = vpop.f32.mrb[3].mxu1 }
 0x11f   : > { %v2116_v0 = vpop.f32.mrb[0].mxu0 }
 0x120   : > { %v2128_v2 = vadd.f32 %v2116_v0, %v2046_v60  ;;  %v1579_v3 = vpop.f32.mrb[1].mxu0 }
 0x121   : > { %v2129_v4 = vadd.f32 %v1579_v3, %v940_v61 }
 0x122   : > { %v1642_v5 = vadd.f32 %v2128_v2, %v1913_v1 }
 0x123   : > { %v1641_v6 = vadd.f32 %v2129_v4, %v1913_v1  ;;  %v2119_v7 = vpop.f32.mrb[2].mxu0 }
 0x124   : > { %1651 = vst.msk [vmem:[%s2535_s14 + $0x8] sm:$0xff] %vm1649_vm2, %v1642_v5  ;;  %v2130_v8 = vadd.f32 %v2119_v7, %v2049_v62  ;;  %v1589_v9 = vpop.f32.mrb[3].mxu0 }
 0x125   : > { %1650 = vst.msk [vmem:[%s2535_s14] sm:$0xff] %vm1649_vm2, %v1641_v6  ;;  %v2131_v10 = vadd.f32 %v1589_v9, %v950_v63 }
 0x126   : > { %v1644_v11 = vadd.f32 %v2130_v8, %v1913_v1 }
 0x127   : > { %v1643_v12 = vadd.f32 %v2131_v10, %v1913_v1  ;;  %v2122_v13 = vpop.f32.mrb[4].mxu0 }
 0x128   : > { %v2066_v14 = vpop.f32.mrb[4].mxu1  ;;  %1653 = vst.msk [vmem:[%s2535_s14 + $0x18] sm:$0xff] %vm1649_vm2, %v1644_v11  ;;  %v1599_v16 = vpop.f32.mrb[5].mxu0 }
 0x129   : > { %v2132_v15 = vadd.f32 %v2122_v13, %v2066_v14  ;;  %v1094_v17 = vpop.f32.mrb[5].mxu1  ;;  %1652 = vst.msk [vmem:[%s2535_s14 + $0x10] sm:$0xff] %vm1649_vm2, %v1643_v12 }
 0x12a   : > { %v2133_v18 = vadd.f32 %v1599_v16, %v1094_v17 }
 0x12b   : > { %v1646_v19 = vadd.f32 %v2132_v15, %v1913_v1  ;;  %v2125_v21 = vpop.f32.mrb[6].mxu0 }
 0x12c   : > { %v1645_v20 = vadd.f32 %v2133_v18, %v1913_v1  ;;  %v2069_v22 = vpop.f32.mrb[6].mxu1  ;;  %v1609_v24 = vpop.f32.mrb[7].mxu0 }
 0x12d   : > { %1655 = vst.msk [vmem:[%s2535_s14 + $0x28] sm:$0xff] %vm1649_vm2, %v1646_v19  ;;  %v2134_v23 = vadd.f32 %v2125_v21, %v2069_v22  ;;  %v1104_v25 = vpop.f32.mrb[7].mxu1 }
 0x12e   : > { %1654 = vst.msk [vmem:[%s2535_s14 + $0x20] sm:$0xff] %vm1649_vm2, %v1645_v20  ;;  %v2135_v26 = vadd.f32 %v1609_v24, %v1104_v25 }
 0x12f   : > { %v1648_v27 = vadd.f32 %v2134_v23, %v1913_v1 }
 0x130   : > { %v1647_v28 = vadd.f32 %v2135_v26, %v1913_v1 }
 0x131   : > { %1657 = vst.msk [vmem:[%s2535_s14 + $0x38] sm:$0xff] %vm1649_vm2, %v1648_v27 }
 0x132   : > { %1656 = vst.msk [vmem:[%s2535_s14 + $0x30] sm:$0xff] %vm1649_vm2, %v1647_v28 }
 0x133 PF: > { %s16_s23 = sadd.s32 1, %s2240_s23   ;;  %s2569_s21 = smov %s2236_s22 }
 0x134   : > { %p13_p5 = scmp.ge.s32.totalorder %s16_s23, 4   ;;  %s2570_s22 = smov %s2572_s24 }
 0x136   :  { %15 = sbr.rel (!%p13_p5) target bundleno = 2 (0x2), region = 91 }

</bundles_post_ra>
